<compile_context>
chip_gen: v6e
topology: v6e:2x2x1
jax: 0.10.0
libtpu: 0.0.40
codegen_flags: <defaults>
</compile_context>

<pallas_src>
import jax
import jax.numpy as jnp
from jax.experimental import pallas as pl
from jax.experimental.pallas import tpu as pltpu

HIDDEN = 32          # hidden_size; 4*HIDDEN == 128 sublane rows (4 x 32-row gate blocks)
assert (4 * HIDDEN) % 8 == 0 and HIDDEN % 8 == 0
# TODO(synk): the PyTorch default is hidden_size=50; 32 keeps every gate block
# vreg-aligned (multiples of 8 sublanes) and matches the small-shape demo.


def _round_up(n, m):
    return (n + m - 1) // m * m


def lstm_regressor_kernel(x_ref, wih_ref, b_ref, wfc_ref, bfc_ref, out_ref):
    """One batch tile: 1-step LSTM cell (zero state) fused with the fc head.

    Transposed layout: gates on sublanes, batch on lanes.
      x_ref   : (I, blk)        input tile, batch on the lane axis
      wih_ref : (4H, I)         resident W_ih (PyTorch gate order [i|f|g|o])
      b_ref   : (4H, 1)         resident b_ih + b_hh
      wfc_ref : (1, H)          resident fc weights
      bfc_ref : (1, 1)          fc bias
      out_ref : (1, blk)        lane-dense output tile
    """
    H = HIDDEN

    # gates_T = W_ih @ x_T + (b_ih + b_hh); the h0 @ W_hh^T term is identically
    # zero (h0 == 0) and is not computed.  Operands may be bf16; accumulate f32.
    gates = jnp.dot(wih_ref[...], x_ref[...],
                    preferred_element_type=jnp.float32) + b_ref[...]

    # Gate blocks are vreg-aligned 32-row sublane slices.  Only the needed
    # transcendentals are evaluated (no whole-128-row sigmoid/tanh sweeps).
    i = jax.nn.sigmoid(gates[0 * H:1 * H, :])
    # f-gate: sigmoid(f) * c0 == 0 because c0 == 0 -> never computed.
    g = jnp.tanh(gates[2 * H:3 * H, :])
    o = jax.nn.sigmoid(gates[3 * H:4 * H, :])

    c = i * g                      # c = f*c0 + i*g with f*c0 == 0
    h = o * jnp.tanh(c)            # (H, blk), all f32 on the VPU/EUP

    # fc head: (1, H) @ (H, blk) -> (1, blk), lane-dense store.
    out_ref[...] = (jnp.dot(wfc_ref[...], h,
                            preferred_element_type=jnp.float32)
                    + bfc_ref[...])


def lstm_regressor(x, weight_ih, weight_hh, bias_ih, bias_hh, fc_w, fc_b,
                   *, block_b=2048, use_bf16=True):
    """forward(x) of LSTMRegressor: x:(B, I) -> (B, 1).

    Parameters are in PyTorch layout:
      weight_ih (4H,I), weight_hh (4H,H), bias_ih (4H,), bias_hh (4H,),
      fc_w (1,H), fc_b (1,).
    """
    B, I = x.shape
    H = HIDDEN
    assert weight_ih.shape == (4 * H, I)

    # Single timestep with zero initial state: h0 @ W_hh^T == 0 and f*c0 == 0,
    # so weight_hh never reaches the kernel (bias_hh still does).
    del weight_hh

    b = (bias_ih + bias_hh).reshape(4 * H, 1).astype(jnp.float32)
    wfc = fc_w.reshape(1, H).astype(jnp.float32)
    bfc = fc_b.reshape(1, 1).astype(jnp.float32)

    # bf16 matmul operands on every chip generation (all MXUs are bf16-native;
    # only v5e's VPU/EUP lack bf16, and the elementwise chain stays f32).
    cdt = jnp.bfloat16 if use_bf16 else jnp.float32
    w_c = weight_ih.astype(cdt)                      # (4H, I), resident

    # Batch tiling: batch lives on the lane axis, so the block must be a
    # multiple of 128.  Cap the block so the 1-D grid keeps >= 2 steps when
    # there is enough work (both v7x TensorCores stay busy).
    B_pad0 = _round_up(B, 128)
    blk = _round_up(max(128, min(block_b, B_pad0)), 128)
    if B_pad0 >= 2 * 128:
        blk = min(blk, _round_up((B_pad0 + 1) // 2, 128))
    B_pad = _round_up(B, blk)

    x_c = x.astype(cdt)
    if B_pad != B:
        x_c = jnp.pad(x_c, ((0, B_pad - B), (0, 0)))
    x_t = x_c.T                                      # (I, B_pad), batch on lanes

    grid = (B_pad // blk,)
    cost = pl.CostEstimate(
        flops=2 * B_pad * I * 4 * H + 2 * B_pad * H,
        transcendentals=4 * H * B_pad,
        bytes_accessed=(x_t.size * x_t.dtype.itemsize
                        + w_c.size * w_c.dtype.itemsize
                        + 4 * B_pad + 4 * (4 * H + H + 2)))

    out = pl.pallas_call(
        lstm_regressor_kernel,
        out_shape=jax.ShapeDtypeStruct((1, B_pad), jnp.float32),
        grid=grid,
        in_specs=[
            pl.BlockSpec((I, blk), lambda i: (0, i)),       # x^T tile (pipelined)
            pl.BlockSpec((4 * H, I), lambda i: (0, 0)),     # W_ih      (resident)
            pl.BlockSpec((4 * H, 1), lambda i: (0, 0)),     # b_ih + b_hh
            pl.BlockSpec((1, H), lambda i: (0, 0)),         # fc weights
            pl.BlockSpec((1, 1), lambda i: (0, 0)),         # fc bias
        ],
        out_specs=pl.BlockSpec((1, blk), lambda i: (0, i)),  # lane-dense output
        compiler_params=pltpu.CompilerParams(
            dimension_semantics=("parallel",)),
        cost_estimate=cost,
    )(x_t, w_c, b, wfc, bfc)
    return out[0, :B].reshape(B, 1)


def reference_f32(x, weight_ih, weight_hh, bias_ih, bias_hh, fc_w, fc_b):
    """Full-fidelity f32 LSTM cell + fc (keeps forget gate and h0/c0 terms)."""
    H = HIDDEN
    B = x.shape[0]
    h0 = jnp.zeros((B, H), jnp.float32)
    c0 = jnp.zeros((B, H), jnp.float32)
    hp = jax.lax.Precision.HIGHEST
    gates = (jnp.dot(x, weight_ih.T, precision=hp)
             + jnp.dot(h0, weight_hh.T, precision=hp)
             + bias_ih + bias_hh)
    i = jax.nn.sigmoid(gates[:, 0 * H:1 * H])
    f = jax.nn.sigmoid(gates[:, 1 * H:2 * H])
    g = jnp.tanh(gates[:, 2 * H:3 * H])
    o = jax.nn.sigmoid(gates[:, 3 * H:4 * H])
    c = f * c0 + i * g
    h = o * jnp.tanh(c)
    return jnp.dot(h, fc_w.T, precision=hp) + fc_b


if __name__ == "__main__":
    H = HIDDEN
    I = 16

    key = jax.random.PRNGKey(0)
    kx, k1, k2, k3, k4, k5, k6, kx2 = jax.random.split(key, 8)
    bound = 1.0 / (H ** 0.5)     # PyTorch default init range for LSTM / Linear

    weight_ih = jax.random.uniform(k1, (4 * H, I), jnp.float32, -bound, bound)
    weight_hh = jax.random.uniform(k2, (4 * H, H), jnp.float32, -bound, bound)
    bias_ih = jax.random.uniform(k3, (4 * H,), jnp.float32, -bound, bound)
    bias_hh = jax.random.uniform(k4, (4 * H,), jnp.float32, -bound, bound)
    fc_w = jax.random.uniform(k5, (1, H), jnp.float32, -bound, bound)
    fc_b = jax.random.uniform(k6, (1,), jnp.float32, -bound, bound)

    # --- Test 1: B=100 (single grid step after padding to 128). -------------
    B = 100
    x = jax.random.normal(kx, (B, I), dtype=jnp.float32)
    ref = reference_f32(x, weight_ih, weight_hh, bias_ih, bias_hh, fc_w, fc_b)

    out_f32 = lstm_regressor(x, weight_ih, weight_hh, bias_ih, bias_hh,
                             fc_w, fc_b, use_bf16=False)
    out_f32 = jax.block_until_ready(out_f32)
    assert out_f32.shape == (B, 1)
    assert jnp.allclose(out_f32, ref, atol=5e-3, rtol=5e-3)

    out_bf16 = lstm_regressor(x, weight_ih, weight_hh, bias_ih, bias_hh,
                              fc_w, fc_b, use_bf16=True)
    out_bf16 = jax.block_until_ready(out_bf16)
    assert out_bf16.shape == (B, 1)
    assert jnp.allclose(out_bf16, ref, atol=3e-2, rtol=3e-2)

    # --- Test 2: B=260 with a small block -> 3 grid steps (multi-tile path). -
    B2 = 260
    x2 = jax.random.normal(kx2, (B2, I), dtype=jnp.float32)
    ref2 = reference_f32(x2, weight_ih, weight_hh, bias_ih, bias_hh, fc_w, fc_b)
    out2 = lstm_regressor(x2, weight_ih, weight_hh, bias_ih, bias_hh,
                          fc_w, fc_b, block_b=128, use_bf16=True)
    out2 = jax.block_until_ready(out2)
    assert out2.shape == (B2, 1)
    assert jnp.allclose(out2, ref2, atol=3e-2, rtol=3e-2)

    print("KERNEL_OK")
</pallas_src>

<mosaic_0001>
module attributes {stable_mosaic.version = 11 : i64} {
  func.func @lstm_regressor_kernel(%arg0: i32, %arg1: memref<16x128xf32, #tpu.memory_space<vmem>>, %arg2: memref<128x16xf32, #tpu.memory_space<vmem>>, %arg3: memref<128x1xf32, #tpu.memory_space<vmem>>, %arg4: memref<1x32xf32, #tpu.memory_space<vmem>>, %arg5: memref<1x1xf32, #tpu.memory_space<vmem>>, %arg6: memref<1x128xf32, #tpu.memory_space<vmem>>) attributes {dimension_semantics = [#tpu.dimension_semantics<parallel>], iteration_bounds = array<i64: 1>, scalar_prefetch = 0 : i64, scratch_operands = 0 : i64, tpu.core_type = #tpu.core_type<tc>, window_params = [{transform_indices = @transform_0, window_bounds = array<i64: 16, 128>}, {pipeline_mode = #tpu.pipeline_mode<synchronous>, transform_indices = @transform_1, window_bounds = array<i64: 128, 16>}, {pipeline_mode = #tpu.pipeline_mode<synchronous>, transform_indices = @transform_2, window_bounds = array<i64: 128, 1>}, {pipeline_mode = #tpu.pipeline_mode<synchronous>, transform_indices = @transform_3, window_bounds = array<i64: 1, 32>}, {pipeline_mode = #tpu.pipeline_mode<synchronous>, transform_indices = @transform_4, window_bounds = array<i64: 1, 1>}, {transform_indices = @transform_5, window_bounds = array<i64: 1, 128>}]} {
    %c0 = arith.constant 0 : index
    %c0_0 = arith.constant 0 : index
    %0 = vector.load %arg2[%c0, %c0_0] : memref<128x16xf32, #tpu.memory_space<vmem>>, vector<128x16xf32>
    %c0_1 = arith.constant 0 : index
    %c0_2 = arith.constant 0 : index
    %1 = vector.load %arg1[%c0_1, %c0_2] : memref<16x128xf32, #tpu.memory_space<vmem>>, vector<16x128xf32>
    %cst = arith.constant dense<0.000000e+00> : vector<128x128xf32>
    %2 = tpu.matmul %0, %1, %cst {dimension_numbers = #tpu.dot_dimension_numbers<[1], [0], [0], [1], [0, 0, 1, 1], [], []>} : vector<128x16xf32>, vector<16x128xf32>, vector<128x128xf32> -> vector<128x128xf32>
    %c0_3 = arith.constant 0 : index
    %c0_4 = arith.constant 0 : index
    %3 = vector.load %arg3[%c0_3, %c0_4] : memref<128x1xf32, #tpu.memory_space<vmem>>, vector<128x1xf32>
    %4 = vector.broadcast %3 : vector<128x1xf32> to vector<128x128xf32>
    %5 = arith.addf %2, %4 : vector<128x128xf32>
    %6 = vector.extract_strided_slice %5 {offsets = [0, 0], sizes = [32, 128], strides = [1, 1]} : vector<128x128xf32> to vector<32x128xf32>
    %7 = arith.negf %6 : vector<32x128xf32>
    %8 = math.exp %7 : vector<32x128xf32>
    %cst_5 = arith.constant 1.000000e+00 : f32
    %9 = vector.broadcast %cst_5 : f32 to vector<32x128xf32>
    %10 = arith.addf %9, %8 : vector<32x128xf32>
    %11 = arith.divf %9, %10 : vector<32x128xf32>
    %12 = vector.extract_strided_slice %5 {offsets = [64, 0], sizes = [32, 128], strides = [1, 1]} : vector<128x128xf32> to vector<32x128xf32>
    %13 = math.tanh %12 : vector<32x128xf32>
    %14 = vector.extract_strided_slice %5 {offsets = [96, 0], sizes = [32, 128], strides = [1, 1]} : vector<128x128xf32> to vector<32x128xf32>
    %15 = arith.negf %14 : vector<32x128xf32>
    %16 = math.exp %15 : vector<32x128xf32>
    %cst_6 = arith.constant 1.000000e+00 : f32
    %17 = vector.broadcast %cst_6 : f32 to vector<32x128xf32>
    %18 = arith.addf %17, %16 : vector<32x128xf32>
    %19 = arith.divf %17, %18 : vector<32x128xf32>
    %20 = arith.mulf %11, %13 : vector<32x128xf32>
    %21 = math.tanh %20 : vector<32x128xf32>
    %22 = arith.mulf %19, %21 : vector<32x128xf32>
    %c0_7 = arith.constant 0 : index
    %c0_8 = arith.constant 0 : index
    %23 = vector.load %arg4[%c0_7, %c0_8] : memref<1x32xf32, #tpu.memory_space<vmem>>, vector<1x32xf32>
    %cst_9 = arith.constant dense<0.000000e+00> : vector<1x128xf32>
    %24 = tpu.matmul %23, %22, %cst_9 {dimension_numbers = #tpu.dot_dimension_numbers<[1], [0], [0], [1], [0, 0, 1, 1], [], []>} : vector<1x32xf32>, vector<32x128xf32>, vector<1x128xf32> -> vector<1x128xf32>
    %c0_10 = arith.constant 0 : index
    %c0_11 = arith.constant 0 : index
    %25 = vector.load %arg5[%c0_10, %c0_11] : memref<1x1xf32, #tpu.memory_space<vmem>>, vector<1x1xf32>
    %26 = vector.broadcast %25 : vector<1x1xf32> to vector<1x128xf32>
    %27 = arith.addf %24, %26 : vector<1x128xf32>
    %c0_12 = arith.constant 0 : index
    %c0_13 = arith.constant 0 : index
    %28 = vector.load %arg6[%c0_12, %c0_13] : memref<1x128xf32, #tpu.memory_space<vmem>>, vector<1x128xf32>
    tpu.vector_store %arg6[%c0_12, %c0_13], %27 {strides = array<i32>} : memref<1x128xf32, #tpu.memory_space<vmem>>, vector<1x128xf32>,
    return
  }
  func.func @transform_0(%arg0: i32) -> (i32, i32) {
    %c0_i32 = arith.constant 0 : i32
    %c0_i32_0 = arith.constant 0 : i32
    return %c0_i32, %arg0 : i32, i32
  }
  func.func @transform_1(%arg0: i32) -> (i32, i32) {
    %c0_i32 = arith.constant 0 : i32
    %c0_i32_0 = arith.constant 0 : i32
    %c0_i32_1 = arith.constant 0 : i32
    return %c0_i32, %c0_i32_0 : i32, i32
  }
  func.func @transform_2(%arg0: i32) -> (i32, i32) {
    %c0_i32 = arith.constant 0 : i32
    %c0_i32_0 = arith.constant 0 : i32
    %c0_i32_1 = arith.constant 0 : i32
    return %c0_i32, %c0_i32_0 : i32, i32
  }
  func.func @transform_3(%arg0: i32) -> (i32, i32) {
    %c0_i32 = arith.constant 0 : i32
    %c0_i32_0 = arith.constant 0 : i32
    %c0_i32_1 = arith.constant 0 : i32
    return %c0_i32, %c0_i32_0 : i32, i32
  }
  func.func @transform_4(%arg0: i32) -> (i32, i32) {
    %c0_i32 = arith.constant 0 : i32
    %c0_i32_0 = arith.constant 0 : i32
    %c0_i32_1 = arith.constant 0 : i32
    return %c0_i32, %c0_i32_0 : i32, i32
  }
  func.func @transform_5(%arg0: i32) -> (i32, i32) {
    %c0_i32 = arith.constant 0 : i32
    %c0_i32_0 = arith.constant 0 : i32
    return %c0_i32, %arg0 : i32, i32
  }
}

</mosaic_0001>

<bundles_post_ra>
// kernel: tpu_custom_call.1
= control target key start
LH: loop header
LB: loop body
LE: loop exit
PB: predicated region body
PF: predicated region fallthrough
CT: control target
= control target key end

     0   :  { %s808_s0 = inlined_call_operand.vmem [shape: f32[16,128], index: 0, kind: input, shape index: {}]   ;;  %s809_s1 = inlined_call_operand.vmem [shape: f32[128,16], index: 1, kind: input, shape index: {}]   ;;  %s810_s2 = inlined_call_operand.vmem [shape: f32[128,1], index: 2, kind: input, shape index: {}]   ;;  %s811_s3 = inlined_call_operand.vmem [shape: f32[1,32], index: 3, kind: input, shape index: {}]   ;;  %s812_s4 = inlined_call_operand.<no memory space> [shape: f32[1,1], index: 4, kind: input, shape index: {}]   ;;  %s813_s5 = inlined_call_operand.hbm [shape: f32[1,128], index: 5, kind: output, shape index: {}]  }
   0x1   :  { %v10_v0 = vstv %s812_s4 }
   0x2   :  { %11 = vst [vmem:[#allocation2] sm:$0x1] %v10_v0 }
   0x3   :  { %v40_v1 = vld [vmem:[%s808_s0 + $0x8] sm:$0xff]  ;;  %v39_v2 = vld [vmem:[%s808_s0] sm:$0xff]  ;;  %vm133_vm0 = vcmask 130048   ;;  %v33_v4 = vld [vmem:[%s809_s1 + $0x50] sm:$0xff]  ;;  %v654_v15 = vmov 0  }
   0x4   :  { %535 = vmatprep.subr.mxu0 %v40_v1  ;;  %574 = vmatprep.subr.mxu1 %v40_v1  ;;  %v23_v3 = vld [vmem:[%s809_s1] sm:$0xff]  ;;  %v24_v5 = vld [vmem:[%s809_s1 + $0x8] sm:$0xff]  ;;  %v34_v6 = vld [vmem:[%s809_s1 + $0x58] sm:$0xff] }
   0x5   :  { %536 = vmatpush3.msra.mxu0 %v40_v1  ;;  %576 = vmatpush3.msra.mxu1 %v40_v1  ;;  %v25_v7 = vld [vmem:[%s809_s1 + $0x10] sm:$0xff]  ;;  %v35_v8 = vld [vmem:[%s809_s1 + $0x60] sm:$0xff]  ;;  %v44_v9 = vld [vmem:[%s810_s2 + $0x18] sm:$0xff] }
   0x6   :  { %537 = vmatprep.subr.mxu0 %v39_v2  ;;  %575 = vmatprep.subr.mxu1 %v39_v2  ;;  %v26_v10 = vld [vmem:[%s809_s1 + $0x18] sm:$0xff]  ;;  %v36_v11 = vld [vmem:[%s809_s1 + $0x68] sm:$0xff]  ;;  %v27_v13 = vld [vmem:[%s809_s1 + $0x20] sm:$0xff] }
   0x7   :  { %538 = vmatpush3.msra.mxu0 %v39_v2  ;;  %577 = vmatpush3.msra.mxu1 %v39_v2  ;;  %v42_v12 = vld [vmem:[%s810_s2 + $0x8] sm:$0xff]  ;;  %v37_v14 = vld [vmem:[%s809_s1 + $0x70] sm:$0xff]  ;;  %v41_v17 = vld [vmem:[%s810_s2] sm:$0xff] }
   0x8   :  { %539 = vmatprep.mubr.msk.f32.mxu0 %vm133_vm0, %v23_v3  ;;  %554 = vmatprep.mubr.msk.f32.mxu1 %vm133_vm0, %v33_v4  ;;  %v43_v16 = vld [vmem:[%s810_s2 + $0x10] sm:$0xff] }
   0x9   :  { %540 = vmatmul.mubr.msk.f32.vlgmr.msra.gmra.mxu0 %vm133_vm0, %v24_v5  ;;  %555 = vmatmul.mubr.msk.f32.vlgmr.msra.gmra.mxu1 %vm133_vm0, %v34_v6 }
   0xa   :  { %542 = vmatprep.mubr.msk.f32.mxu0 %vm133_vm0, %v25_v7  ;;  %557 = vmatprep.mubr.msk.f32.mxu1 %vm133_vm0, %v35_v8 }
   0xb   :  { %582 = vset.pattern.permute.xlu0 %v654_v15  ;;  %583 = vset.pattern.permute.xlu1 %v654_v15 }
   0xc   :  { %74 = vperm.xlu0 %582, %v44_v9   ;;  %64 = vperm.xlu1 %583, %v42_v12  }
   0xd   :  { %543 = vmatmul.mubr.msk.f32.gmra.mxu0 %vm133_vm0, %v26_v10  ;;  %558 = vmatmul.mubr.msk.f32.gmra.mxu1 %vm133_vm0, %v36_v11 }
   0xe   :  { %12 = vsyncpa [#allocation4], 0  ;;  %545 = vmatprep.mubr.msk.f32.mxu0 %vm133_vm0, %v27_v13  ;;  %560 = vmatprep.mubr.msk.f32.mxu1 %vm133_vm0, %v37_v14  ;;  %v28_v18 = vld [vmem:[%s809_s1 + $0x28] sm:$0xff]  ;;  %v38_v19 = vld [vmem:[%s809_s1 + $0x78] sm:$0xff]  ;;  %v655_v33 = vmov 0.0   ;;  %vm656_vm1 = vmmov 0  }
   0xf   :  { %v29_v20 = vld [vmem:[%s809_s1 + $0x30] sm:$0xff]  ;;  %v56_v21 = vld [vmem:[%s810_s2 + $0x78] sm:$0xff]  ;;  %v31_v24 = vld [vmem:[%s809_s1 + $0x40] sm:$0xff]  ;;  %563 = vmatprep.subr.mxu1 %v655_v33  ;;  %vm398_vm2 = vcmask 261120   ;;  %s657_s26 = smov [#allocation3]  }
  0x10   :  { %69 = vperm.xlu0 %582, %v43_v16   ;;  %59 = vperm.xlu1 %583, %v41_v17   ;;  %v52_v22 = vld [vmem:[%s810_s2 + $0x58] sm:$0xff]  ;;  %v55_v25 = vld [vmem:[%s810_s2 + $0x70] sm:$0xff]  ;;  %v32_v27 = vld [vmem:[%s809_s1 + $0x48] sm:$0xff]  ;;  %s479_s4 = sshll.u32 %s657_s26, 4  ;;  %s480_s4 = int_to_ptr.vmem [resolvable:$true] %s479_s4 }
  0x11   :  { %546 = vmatmul.mubr.msk.f32.gmra.mxu0 %vm133_vm0, %v28_v18  ;;  %561 = vmatmul.mubr.msk.f32.gmra.mxu1 %vm133_vm0, %v38_v19  ;;  %v30_v23 = vld [vmem:[%s809_s1 + $0x38] sm:$0xff]  ;;  %v51_v26 = vld [vmem:[%s810_s2 + $0x50] sm:$0xff]  ;;  %v54_v28 = vld [vmem:[%s810_s2 + $0x68] sm:$0xff]  ;;  %s632_s27 = scalar_lea.vmem %s480_s4, 16  ;;  %p637_p1 = scmp.lt.s32.totalorder %s480_s4, %s480_s4 }
  0x12   :  { %548 = vmatprep.mubr.msk.f32.mxu0 %vm133_vm0, %v29_v20  ;;  %v50_v29 = vld [vmem:[%s810_s2 + $0x48] sm:$0xff]  ;;  %v53_v30 = vld [vmem:[%s810_s2 + $0x60] sm:$0xff]  ;;  %571 = vmatprep.mubr.msk.f32.mxu1 %vm656_vm1, %v655_v33  ;;  %p633_p0 = scmp.ne.s32.totalorder %s480_s4, %s632_s27 }
  0x13   :  { %v49_v31 = vld [vmem:[%s810_s2 + $0x40] sm:$0xff] }
  0x14   :  { %130 = vperm.xlu0 %582, %v56_v21   ;;  %110 = vperm.xlu1 %583, %v52_v22   ;;  %v388_v32 = vld [vmem:[#allocation2] sm:$0x1] }
  0x15   :  { %549 = vmatmul.mubr.msk.f32.gmra.mxu0 %vm133_vm0, %v30_v23 }
  0x16   :  { %551 = vmatprep.mubr.msk.f32.mxu0 %vm133_vm0, %v31_v24 }
  0x18   :  { %125 = vperm.xlu0 %582, %v55_v25   ;;  %105 = vperm.xlu1 %583, %v51_v26  }
  0x19   :  { %552 = vmatmul.mubr.msk.f32.gmra.mxu0 %vm133_vm0, %v32_v27 }
  0x1c   :  { %120 = vperm.xlu0 %582, %v54_v28   ;;  %100 = vperm.xlu1 %583, %v50_v29  }
  0x20   :  { %115 = vperm.xlu0 %582, %v53_v30   ;;  %95 = vperm.xlu1 %583, %v49_v31  }
  0x24   :  { %391 = vperm.xlu0 %582, %v388_v32  }
  0x87   :  { %v75_v34 = vpop.permute.xlu0 %74  ;;  %v65_v36 = vpop.permute.xlu1 %64 }
  0x8b   :  { %v70_v35 = vpop.permute.xlu0 %69  ;;  %v60_v38 = vpop.permute.xlu1 %59 }
  0x8f   :  { %v131_v37 = vpop.permute.xlu0 %130  ;;  %v111_v45 = vpop.permute.xlu1 %110 }
  0x93   :  { %v126_v39 = vpop.permute.xlu0 %125  ;;  %v106_v59 = vpop.permute.xlu1 %105 }
  0x97   :  { %v121_v50 = vpop.permute.xlu0 %120  ;;  %v101_v9 = vpop.permute.xlu1 %100 }
  0x9b   :  { %v116_v1 = vpop.permute.xlu0 %115  ;;  %v96_v20 = vpop.permute.xlu1 %95 }
  0xc9   :  { %v541_v40 = vpop.f32.mrf.mxu0  ;;  %v556_v41 = vpop.f32.mrf.mxu1 }
  0xca   :  { %v254_v42 = vadd.f32 %v541_v40, %v65_v36  ;;  %v300_v2 = vadd.f32 %v556_v41, %v111_v45 }
  0xcb   :  { %v248_v43 = vpop.f32.mrf.mxu0  ;;  %v294_v44 = vpop.f32.mrf.mxu1 }
  0xcc   :  { %v504_v46 = vmul.f32 -1.442695, %v254_v42  ;;  %v249_v47 = vadd.f32 %v248_v43, %v60_v38  ;;  %v295_v5 = vadd.f32 %v294_v44, %v106_v59  ;;  %v387_v59 = vld [vmem:[%s811_s3] sm:$0x1]  ;;  %s636_s3 = scalar_lea.vmem %s480_s4, 32 }
  0xcd   :  { %v544_v48 = vpop.f32.mrf.mxu0  ;;  %v559_v49 = vpop.f32.mrf.mxu1  ;;  %p638_p2 = scmp.lt.s32.totalorder %s636_s3, %s632_s27 }
  0xce   :  { %584 = vpow2.f32 %v504_v46  ;;  %v503_v51 = vmul.f32 -1.442695, %v249_v47  ;;  %v264_v52 = vadd.f32 %v544_v48, %v75_v34  ;;  %v310_v61 = vadd.f32 %v559_v49, %v121_v50 }
  0xcf   :  { %v258_v53 = vpop.f32.mrf.mxu0  ;;  %v304_v54 = vpop.f32.mrf.mxu1  ;;  %p639_p3 = por %p638_p2, %p637_p1 }
  0xd0   :  { %586 = vpow2.f32 %v503_v51  ;;  %v506_v55 = vmul.f32 -1.442695, %v264_v52  ;;  %v259_v56 = vadd.f32 %v258_v53, %v70_v35  ;;  %v305_v6 = vadd.f32 %v304_v54, %v116_v1 }
  0xd1   :  { %v547_v57 = vpop.f32.mrf.mxu0  ;;  %v562_v58 = vpop.f32.mrf.mxu1  ;;  %v508_v7 = vmul.f32 -1.442695, %v310_v61  ;;  %p640_p4 = pnand %p639_p3, %p633_p0 }
  0xd2   :  { %588 = vpow2.f32 %v506_v55  ;;  %v505_v60 = vmul.f32 -1.442695, %v259_v56  ;;  %v320_v0 = vadd.f32 %v562_v58, %v131_v37  ;;  %v507_v13 = vmul.f32 -1.442695, %v305_v6 }
  0xd3   :  { %v268_v62 = vpop.f32.mrf.mxu0  ;;  %v314_v63 = vpop.f32.mrf.mxu1 }
  0xd4   :  { %590 = vpow2.f32 %v505_v60  ;;  %v315_v3 = vadd.f32 %v314_v63, %v126_v39  ;;  %v510_v10 = vmul.f32 -1.442695, %v320_v0  ;;  %v394_v60 = vlaneseq  ;;  %v392_v63 = vpop.permute.xlu0 %391 }
  0xd5   :  { %v550_v4 = vpop.f32.mrf.mxu0  ;;  %592 = vtanh.f32 %v300_v2 }
  0xd6   :  { %v509_v11 = vmul.f32 -1.442695, %v315_v3  ;;  %594 = vtanh.f32 %v295_v5  ;;  %v395_v61 = vshrl.u32 %v394_v60, 7 }
  0xd7   :  { %v276_v8 = vpop.f32.mrf.mxu0  ;;  %596 = vpow2.f32 %v508_v7 }
  0xd8   :  { %598 = vpow2.f32 %v510_v10  ;;  %v396_v62 = vsub.s32 0, %v395_v61 }
  0xd9   :  { %v553_v12 = vpop.f32.mrf.mxu0  ;;  %600 = vpow2.f32 %v509_v11 }
  0xda   :  { %v290_v16 = vadd.f32 %v553_v12, %v101_v9  ;;  %602 = vpow2.f32 %v507_v13  ;;  %v397_v0 = vrot.slane %v392_v63, %v396_v62 }
  0xdb   :  { %v585_v14 = vpop.eup %584  ;;  %v284_v17 = vpop.f32.mrf.mxu0 }
  0xdc   :  { %v336_v15 = vadd.f32 1.0, %v585_v14  ;;  %v285_v22 = vadd.f32 %v284_v17, %v96_v20 }
  0xdd   :  { %v587_v18 = vpop.eup %586 }
  0xde   :  { %v335_v19 = vadd.f32 1.0, %v587_v18  ;;  %604 = vrcp.f32 %v336_v15 }
  0xdf   :  { %v589_v21 = vpop.eup %588  ;;  %606 = vtanh.f32 %v290_v16 }
  0xe0   :  { %v338_v23 = vadd.f32 1.0, %v589_v21  ;;  %608 = vrcp.f32 %v335_v19 }
  0xe1   :  { %v591_v24 = vpop.eup %590 }
  0xe2   :  { %610 = vrcp.f32 %v338_v23  ;;  %v337_v25 = vadd.f32 1.0, %v591_v24  ;;  %v593_v26 = vpop.eup %592 }
  0xe3   :  { %612 = vtanh.f32 %v285_v22  ;;  %v595_v27 = vpop.eup %594 }
  0xe4   :  { %614 = vrcp.f32 %v337_v25  ;;  %v597_v28 = vpop.eup %596 }
  0xe5   :  { %v599_v29 = vpop.eup %598  ;;  %v364_v43 = vadd.f32 1.0, %v597_v28 }
  0xe6   :  { %v601_v30 = vpop.eup %600  ;;  %v366_v34 = vadd.f32 1.0, %v599_v29 }
  0xe7   :  { %v603_v31 = vpop.eup %602  ;;  %v365_v36 = vadd.f32 1.0, %v601_v30 }
  0xe8   :  { %616 = vrcp.f32 %v366_v34  ;;  %v363_v46 = vadd.f32 1.0, %v603_v31 }
  0xe9   :  { %618 = vrcp.f32 %v365_v36 }
  0xeb   :  { %v605_v32 = vpop.eup %604 }
  0xec   :  { %v607_v35 = vpop.eup %606 }
  0xed   :  { %v609_v37 = vpop.eup %608  ;;  %v376_v39 = vmul.f32 %v607_v35, %v605_v32 }
  0xef   :  { %v611_v38 = vpop.eup %610 }
  0xf0   :  { %v613_v40 = vpop.eup %612  ;;  %v378_v41 = vmul.f32 %v611_v38, %v593_v26 }
  0xf1   :  { %v615_v42 = vpop.eup %614  ;;  %v375_v45 = vmul.f32 %v613_v40, %v609_v37 }
  0xf2   :  { %620 = vtanh.f32 %v378_v41  ;;  %v377_v44 = vmul.f32 %v615_v42, %v595_v27 }
  0xf3   :  { %622 = vtanh.f32 %v376_v39 }
  0xf4   :  { %624 = vtanh.f32 %v377_v44 }
  0xf5   :  { %626 = vrcp.f32 %v364_v43  ;;  %v617_v47 = vpop.eup %616 }
  0xf6   :  { %628 = vtanh.f32 %v375_v45  ;;  %v619_v48 = vpop.eup %618 }
  0xf7   :  { %630 = vrcp.f32 %v363_v46 }
  0xff   :  { %v621_v49 = vpop.eup %620 }
 0x100   :  { %v623_v50 = vpop.eup %622  ;;  %v386_v51 = vmul.f32 %v621_v49, %v617_v47 }
 0x101   :  { %v625_v52 = vpop.eup %624 }
 0x102   :  { %v627_v53 = vpop.eup %626  ;;  %564 = vmatpush3.msra.mxu1 %v386_v51  ;;  %v385_v54 = vmul.f32 %v625_v52, %v619_v48 }
 0x103   :  { %v629_v55 = vpop.eup %628  ;;  %565 = vmatprep.subr.mxu1 %v655_v33  ;;  %v384_v56 = vmul.f32 %v627_v53, %v623_v50 }
 0x104   :  { %566 = vmatpush3.msra.mxu1 %v385_v54  ;;  %v631_v57 = vpop.eup %630 }
 0x105   :  { %567 = vmatprep.subr.mxu1 %v655_v33  ;;  %v383_v58 = vmul.f32 %v631_v57, %v629_v55 }
 0x106   :  { %568 = vmatpush3.msra.mxu1 %v384_v56 }
 0x107   :  { %569 = vmatprep.subr.mxu1 %v655_v33 }
 0x108   :  { %570 = vmatpush3.msra.mxu1 %v383_v58 }
 0x109   :  { %572 = vmatmul.mubr.msk.f32.vlgmr.msra.gmra.mxu1 %vm398_vm2, %v387_v59 }
 0x1c9   :  { %v468_v1 = vpop.f32.mrf.mxu1 }
 0x1ca   :  { %v469_v2 = vadd.f32 %v468_v1, %v397_v0 }
 0x1cb   :  { %v573_v3 = vpop.f32.mrf.mxu1 }
 0x1cc   :  { %472 = vst [vmem:[#allocation3] sm:$0x1] %v469_v2 }
 0x1cd   :  { %643 = shalt.err (!%p640_p4)
}
 0x1ce   :  { %482 = dma.vmem_to_hbm [thread:$0]  %s480_s4, 16, %s813_s5, [#allocation4]  }
 0x1cf   :  { %652 = dma.done.wait [#allocation4], 16  }
 0x1d0   :  { %653 = vsyncadd [#allocation4], 4294967280 }
 0x1d1   :  { %486 = vsyncpa [#allocation4], 1 }

</bundles_post_ra>
